<compile_context>
chip_gen: v7x
topology: tpu7x:2x2x1
jax: 0.10.0
libtpu: 0.0.40
codegen_flags: <defaults>
</compile_context>

<pallas_src>
import jax
import jax.numpy as jnp
from jax.experimental import pallas as pl
from jax.experimental.pallas import tpu as pltpu

_VMEM_LIMIT_BYTES = 32 * 1024 * 1024  # explicit scoped-VMEM cap; safe on v5e/v6e/v7x


def _concat_linear_kernel(x_ref, u_ref, wx_ref, wu_ref, b_ref, o_ref):
    # out = concat(x, u) @ W + b  ==  x @ Wx + u @ Wu + b   (block-matrix identity)
    acc = jnp.dot(x_ref[...], wx_ref[...], preferred_element_type=jnp.float32)
    acc = acc + jnp.dot(u_ref[...], wu_ref[...], preferred_element_type=jnp.float32)
    o_ref[...] = (acc + b_ref[...]).astype(o_ref.dtype)


def input_concat_linear(x, u, w, b, *, block_b=4096, no_grid_max_b=8192):
    """Pallas implementation of InputConcat(nn.Linear): (x, u) -> concat(x,u) @ W + b."""
    B, dx = x.shape
    Bu, du = u.shape
    assert Bu == B, "x and u must share the batch dimension"
    dz, h = w.shape
    assert dz == dx + du, "W rows must equal Dx + Du"

    w_x, w_u = w[:dx, :], w[dx:, :]  # tiny (Dz, H) weight: wrapper-side split is free

    # --- batch-in-lanes packing: fold `pack` batch rows into the lane axis -----
    pack = 1
    if h < 128:
        for cand in (8, 4, 2):
            if B % cand == 0:
                pack = cand
                break

    if pack > 1:
        xk = x.reshape(B // pack, pack * dx)            # free row-major reshape
        uk = u.reshape(B // pack, pack * du)            # free row-major reshape
        eye = jnp.eye(pack, dtype=w.dtype)
        wxk = jnp.kron(eye, w_x)                        # (pack*dx, pack*h) block-diag
        wuk = jnp.kron(eye, w_u)                        # (pack*du, pack*h) block-diag
        bk = jnp.tile(b.reshape(1, h), (1, pack))       # (1, pack*h)
    else:
        xk, uk, wxk, wuk = x, u, w_x, w_u
        bk = b.reshape(1, h)

    Bk, dxk = xk.shape
    duk = uk.shape[1]
    hk = bk.shape[1]

    if B <= no_grid_max_b:
        # Single invocation, no grid / pipelining machinery: every operand is
        # VMEM-resident for the whole kernel (working set is only a few MiB).
        out_p = pl.pallas_call(
            _concat_linear_kernel,
            out_shape=jax.ShapeDtypeStruct((Bk, hk), x.dtype),
            in_specs=[pl.BlockSpec(memory_space=pltpu.MemorySpace.VMEM)] * 5,
            out_specs=pl.BlockSpec(memory_space=pltpu.MemorySpace.VMEM),
            compiler_params=pltpu.CompilerParams(
                vmem_limit_bytes=_VMEM_LIMIT_BYTES),
        )(xk, uk, wxk, wuk, bk)
    else:
        # Large-batch path: tile only over (packed) batch rows. Weights/bias use
        # constant index_maps so they are DMA'd once and stay VMEM-resident;
        # activations stream through.  "parallel" lets v7x shard row-tiles
        # across both TensorCores (grid length >= 2 because B > no_grid_max_b).
        block_bk = max(8, ((block_b // pack) // 8) * 8)
        out_p = pl.pallas_call(
            _concat_linear_kernel,
            out_shape=jax.ShapeDtypeStruct((Bk, hk), x.dtype),
            grid=(pl.cdiv(Bk, block_bk),),
            in_specs=[
                pl.BlockSpec((block_bk, dxk), lambda i: (i, 0)),
                pl.BlockSpec((block_bk, duk), lambda i: (i, 0)),
                pl.BlockSpec((dxk, hk), lambda i: (0, 0)),
                pl.BlockSpec((duk, hk), lambda i: (0, 0)),
                pl.BlockSpec((1, hk), lambda i: (0, 0)),
            ],
            out_specs=pl.BlockSpec((block_bk, hk), lambda i: (i, 0)),
            compiler_params=pltpu.CompilerParams(
                dimension_semantics=("parallel",),
                vmem_limit_bytes=_VMEM_LIMIT_BYTES),
        )(xk, uk, wxk, wuk, bk)

    return out_p.reshape(B, h)  # free row-major reshape back to (B, H)


if __name__ == "__main__":
    key = jax.random.PRNGKey(0)
    kx, ku, kw, kb = jax.random.split(key, 4)

    # Small shapes consistent with mpcritic's f(x, u) -> R^H critic head.
    B, DX, DU, H = 8, 16, 8, 32
    x = jax.random.normal(kx, (B, DX), dtype=jnp.float32)
    u = jax.random.normal(ku, (B, DU), dtype=jnp.float32)
    w = jax.random.normal(kw, (DX + DU, H), dtype=jnp.float32) * 0.1
    b = jax.random.normal(kb, (H,), dtype=jnp.float32) * 0.1

    def ref_fn(xx, uu):
        return jnp.concatenate((xx, uu), axis=-1) @ w + b

    # 1) Tiny batch: packed (batch-in-lanes), single-invocation no-grid path.
    out = input_concat_linear(x, u, w, b)
    jax.block_until_ready(out)
    assert out.shape == (B, H)
    assert jnp.allclose(out, ref_fn(x, u), atol=2e-5, rtol=2e-5), "mismatch (tiny-B)"

    # 2) Large batch: packed, B-tiled gridded path (block_b=4096, >=2 grid steps).
    kx2, ku2 = jax.random.split(jax.random.PRNGKey(1))
    B2 = 10240
    x2 = jax.random.normal(kx2, (B2, DX), dtype=jnp.float32)
    u2 = jax.random.normal(ku2, (B2, DU), dtype=jnp.float32)
    out2 = input_concat_linear(x2, u2, w, b, block_b=4096)
    jax.block_until_ready(out2)
    assert jnp.allclose(out2, ref_fn(x2, u2), atol=2e-5, rtol=2e-5), "mismatch (tiled)"

    # 3) Odd batch (not divisible by 2): unpacked fallback, no-grid path.
    kx3, ku3 = jax.random.split(jax.random.PRNGKey(2))
    B3 = 45
    x3 = jax.random.normal(kx3, (B3, DX), dtype=jnp.float32)
    u3 = jax.random.normal(ku3, (B3, DU), dtype=jnp.float32)
    out3 = input_concat_linear(x3, u3, w, b)
    jax.block_until_ready(out3)
    assert jnp.allclose(out3, ref_fn(x3, u3), atol=2e-5, rtol=2e-5), "mismatch (odd-B)"

    print("KERNEL_OK")
</pallas_src>

<mosaic_0001>
module attributes {stable_mosaic.version = 11 : i64} {
  func.func @_concat_linear_kernel(%arg0: memref<1x128xf32, #tpu.memory_space<vmem>>, %arg1: memref<1x64xf32, #tpu.memory_space<vmem>>, %arg2: memref<128x256xf32, #tpu.memory_space<vmem>>, %arg3: memref<64x256xf32, #tpu.memory_space<vmem>>, %arg4: memref<1x256xf32, #tpu.memory_space<vmem>>, %arg5: memref<1x256xf32, #tpu.memory_space<vmem>>) attributes {dimension_semantics = [], scalar_prefetch = 0 : i64, scratch_operands = 0 : i64, tpu.core_type = #tpu.core_type<tc>} {
    %c0 = arith.constant 0 : index
    %c0_0 = arith.constant 0 : index
    %0 = vector.load %arg0[%c0, %c0_0] : memref<1x128xf32, #tpu.memory_space<vmem>>, vector<1x128xf32>
    %c0_1 = arith.constant 0 : index
    %c0_2 = arith.constant 0 : index
    %1 = vector.load %arg2[%c0_1, %c0_2] : memref<128x256xf32, #tpu.memory_space<vmem>>, vector<128x256xf32>
    %cst = arith.constant dense<0.000000e+00> : vector<1x256xf32>
    %2 = tpu.matmul %0, %1, %cst {dimension_numbers = #tpu.dot_dimension_numbers<[1], [0], [0], [1], [0, 0, 1, 1], [], []>} : vector<1x128xf32>, vector<128x256xf32>, vector<1x256xf32> -> vector<1x256xf32>
    %c0_3 = arith.constant 0 : index
    %c0_4 = arith.constant 0 : index
    %3 = vector.load %arg1[%c0_3, %c0_4] : memref<1x64xf32, #tpu.memory_space<vmem>>, vector<1x64xf32>
    %c0_5 = arith.constant 0 : index
    %c0_6 = arith.constant 0 : index
    %4 = vector.load %arg3[%c0_5, %c0_6] : memref<64x256xf32, #tpu.memory_space<vmem>>, vector<64x256xf32>
    %cst_7 = arith.constant dense<0.000000e+00> : vector<1x256xf32>
    %5 = tpu.matmul %3, %4, %cst_7 {dimension_numbers = #tpu.dot_dimension_numbers<[1], [0], [0], [1], [0, 0, 1, 1], [], []>} : vector<1x64xf32>, vector<64x256xf32>, vector<1x256xf32> -> vector<1x256xf32>
    %6 = arith.addf %2, %5 : vector<1x256xf32>
    %c0_8 = arith.constant 0 : index
    %c0_9 = arith.constant 0 : index
    %7 = vector.load %arg4[%c0_8, %c0_9] : memref<1x256xf32, #tpu.memory_space<vmem>>, vector<1x256xf32>
    %8 = arith.addf %6, %7 : vector<1x256xf32>
    %c0_10 = arith.constant 0 : index
    %c0_11 = arith.constant 0 : index
    %9 = vector.load %arg5[%c0_10, %c0_11] : memref<1x256xf32, #tpu.memory_space<vmem>>, vector<1x256xf32>
    tpu.vector_store %arg5[%c0_10, %c0_11], %8 {strides = array<i32>} : memref<1x256xf32, #tpu.memory_space<vmem>>, vector<1x256xf32>,
    return
  }
}

</mosaic_0001>

<bundles_post_ra>
// kernel: tpu_custom_call.1
= control target key start
LH: loop header
LB: loop body
LE: loop exit
PB: predicated region body
PF: predicated region fallthrough
CT: control target
= control target key end

     0   :  { %10 = vsyncpa [#allocation3], 0  ;;  %s560_s0 = inlined_call_operand.hbm [shape: f32[1,128], index: 0, kind: input, shape index: {}]   ;;  %s561_s1 = inlined_call_operand.vmem [shape: f32[1,64], index: 1, kind: input, shape index: {}]   ;;  %s562_s2 = inlined_call_operand.hbm [shape: f32[128,256], index: 2, kind: input, shape index: {}]   ;;  %s563_s3 = inlined_call_operand.hbm [shape: f32[64,256], index: 3, kind: input, shape index: {}]   ;;  %s564_s4 = inlined_call_operand.vmem [shape: f32[1,256], index: 4, kind: input, shape index: {}]   ;;  %s565_s5 = inlined_call_operand.hbm [shape: f32[1,256], index: 5, kind: output, shape index: {}]  }
   0x1   :  { %11 = vsyncpa [#allocation6], 0 }
   0x2   :  { %12 = vsyncpa [#allocation4], 0  ;;  %s462_s18 = smov [#allocation5]   ;;  %s368_s22 = scalar_lea.hbm %s562_s2, 4096 }
   0x3   :  { %s30_s19 = sshll.u32 %s462_s18, 4  ;;  %p369_p0 = scmp.ne.s32.totalorder %s562_s2, %s368_s22  ;;  %s31_s19 = int_to_ptr.vmem [resolvable:$true] %s30_s19 }
   0x4   :  { %p372_p1 = scmp.lt.u32.totalorder %s368_s22, %s562_s2 }
   0x6   :  { %p374_p2 = pnand %p372_p1, %p369_p0 }
   0x8   :  { %377 = shalt.err (!%p374_p2)
}
   0x9   :  { %s378_s27 = scalar_lea.vmem %s31_s19, 4096  ;;  %p383_p4 = scmp.lt.s32.totalorder %s31_s19, %s31_s19 }
   0xa   :  { %p379_p3 = scmp.ne.s32.totalorder %s31_s19, %s378_s27  ;;  %p384_p5 = scmp.lt.s32.totalorder %s378_s27, %s378_s27 }
   0xc   :  { %p385_p6 = por %p384_p5, %p383_p4 }
   0xe   :  { %p386_p7 = pnand %p385_p6, %p379_p3 }
  0x10   :  { %389 = shalt.err (!%p386_p7)
}
  0x11   :  { %s463_s28 = smov 256   ;;  %s464_s29 = smov 16  }
  0x12   :  { %36 = dma.hbm_to_vmem [thread:$0]  %s562_s2, 4096, %s31_s19, [#allocation6], %s463_s28, %s463_s28, %s464_s29  }
  0x13   :  { %s465_s7 = smov [#allocation2]   ;;  %s466_s9 = smov [#allocation7]  }
  0x14   :  { %s19_s8 = sshll.u32 %s465_s7, 4  ;;  %s42_s10 = sshll.u32 %s466_s9, 4  ;;  %s20_s8 = int_to_ptr.vmem [resolvable:$true] %s19_s8  ;;  %s43_s10 = int_to_ptr.vmem [resolvable:$true] %s42_s10 }
  0x15   :  { %s390_s13 = scalar_lea.hbm %s560_s0, 16 }
  0x16   :  { %p391_p8 = scmp.ne.s32.totalorder %s560_s0, %s390_s13  ;;  %p394_p9 = scmp.lt.u32.totalorder %s390_s13, %s560_s0 }
  0x18   :  { %p396_p10 = pnand %p394_p9, %p391_p8 }
  0x1a   :  { %399 = shalt.err (!%p396_p10)
}
  0x1b   :  { %s400_s2 = scalar_lea.vmem %s20_s8, 16  ;;  %s404_s18 = scalar_lea.vmem %s20_s8, 32 }
  0x1c   :  { %p401_p11 = scmp.ne.s32.totalorder %s20_s8, %s400_s2  ;;  %p405_p12 = scmp.lt.s32.totalorder %s20_s8, %s20_s8 }
  0x1d   :  { %p406_p13 = scmp.lt.s32.totalorder %s404_s18, %s400_s2 }
  0x1f   :  { %p407_p0 = por %p406_p13, %p405_p12 }
  0x21   :  { %p408_p1 = pnand %p407_p0, %p401_p11 }
  0x23   :  { %411 = shalt.err (!%p408_p1)
}
  0x24   :  { %22 = dma.hbm_to_vmem [thread:$0]  %s560_s0, 16, %s20_s8, [#allocation3]  }
  0x25   :  { %s412_s23 = scalar_lea.hbm %s563_s3, 2048 }
  0x26   :  { %p413_p2 = scmp.ne.s32.totalorder %s563_s3, %s412_s23  ;;  %p416_p3 = scmp.lt.u32.totalorder %s412_s23, %s563_s3 }
  0x28   :  { %p418_p4 = pnand %p416_p3, %p413_p2 }
  0x2a   :  { %421 = shalt.err (!%p418_p4)
}
  0x2b   :  { %s422_s30 = scalar_lea.vmem %s43_s10, 2048  ;;  %p427_p6 = scmp.lt.s32.totalorder %s43_s10, %s43_s10 }
  0x2c   :  { %p423_p5 = scmp.ne.s32.totalorder %s43_s10, %s422_s30  ;;  %p428_p7 = scmp.lt.s32.totalorder %s422_s30, %s422_s30 }
  0x2e   :  { %p429_p8 = por %p428_p7, %p427_p6 }
  0x30   :  { %p430_p9 = pnand %p429_p8, %p423_p5 }
  0x32   :  { %433 = shalt.err (!%p430_p9)
}
  0x33   :  { %48 = dma.hbm_to_vmem [thread:$0]  %s563_s3, 2048, %s43_s10, [#allocation6], %s463_s28, %s463_s28, %s464_s29  }
  0x34   :  { %456 = dma.done.wait [#allocation3], 16  }
  0x35   :  { %457 = vsyncadd [#allocation3], 4294967280 }
  0x36   :  { %458 = dma.done.wait [#allocation6], 6144  }
  0x37   :  { %459 = vsyncadd [#allocation6], 4294961152  ;;  %v467_v0 = vmov 0.0   ;;  %v62_v1 = vld [vmem:[#allocation5 + $0x8] sm:$0xff]  ;;  %v64_v2 = vld [vmem:[#allocation5 + $0x18] sm:$0xff]  ;;  %vm110_vm0 = vcmask 523264  }
  0x38   :  { %178 = vmatprep.mubr.f32.mxu1 %v467_v0  ;;  %249 = vmatprep.mubr.f32.mxu0 %v467_v0  ;;  %v61_v3 = vld [vmem:[#allocation5] sm:$0xff]  ;;  %v326_v4 = vpack.c.bf16 %v64_v2, %v62_v1  ;;  %v63_v5 = vld [vmem:[#allocation5 + $0x10] sm:$0xff]  ;;  %v66_v6 = vld [vmem:[#allocation5 + $0x28] sm:$0xff]  ;;  %s469_s7 = smov [#allocation8]  }
  0x39   :  { %v68_v7 = vld [vmem:[#allocation5 + $0x38] sm:$0xff]  ;;  %v328_v8 = vpack.c.bf16 %v63_v5, %v61_v3  ;;  %v65_v10 = vld [vmem:[#allocation5 + $0x20] sm:$0xff]  ;;  %v67_v11 = vld [vmem:[#allocation5 + $0x30] sm:$0xff]  ;;  %s299_s8 = sshll.u32 %s469_s7, 4  ;;  %s300_s8 = int_to_ptr.vmem [resolvable:$true] %s299_s8 }
  0x3a   :  { %v330_v9 = vpack.c.bf16 %v68_v7, %v66_v6  ;;  %v70_v12 = vld [vmem:[#allocation5 + $0x48] sm:$0xff]  ;;  %327 = vmatprep.subr.bf16.mxu0 %v326_v4  ;;  %v72_v13 = vld [vmem:[#allocation5 + $0x58] sm:$0xff]  ;;  %v332_v14 = vpack.c.bf16 %v67_v11, %v65_v10  ;;  %v69_v15 = vld [vmem:[#allocation5 + $0x40] sm:$0xff]  ;;  %v258_v11 = vlaneseq  ;;  %p439_p11 = scmp.lt.s32.totalorder %s300_s8, %s300_s8 }
  0x3b   :  { %329 = vmatpush1.bf16.msra.mxu0 %v328_v8  ;;  %v71_v16 = vld [vmem:[#allocation5 + $0x50] sm:$0xff]  ;;  %v334_v17 = vpack.c.bf16 %v72_v13, %v70_v12  ;;  %v74_v18 = vld [vmem:[#allocation5 + $0x68] sm:$0xff]  ;;  %v97_v20 = vld [vmem:[#allocation7 + $0x18] sm:$0xff] }
  0x3c   :  { %331 = vmatprep.subr.bf16.mxu0 %v330_v9  ;;  %v95_v19 = vld [vmem:[#allocation7 + $0x8] sm:$0xff]  ;;  %v76_v21 = vld [vmem:[#allocation5 + $0x78] sm:$0xff]  ;;  %v94_v23 = vld [vmem:[#allocation7] sm:$0xff]  ;;  %v336_v26 = vpack.c.bf16 %v71_v16, %v69_v15  ;;  %vm290_vm1 = vcmp.lt.s32.totalorder %v258_v11, 256 }
  0x3d   :  { %v310_v22 = vpack.c.bf16 %v97_v20, %v95_v19  ;;  %v96_v24 = vld [vmem:[#allocation7 + $0x10] sm:$0xff]  ;;  %v99_v27 = vld [vmem:[#allocation7 + $0x28] sm:$0xff]  ;;  %v101_v28 = vld [vmem:[#allocation7 + $0x38] sm:$0xff]  ;;  %v338_v30 = vpack.c.bf16 %v76_v21, %v74_v18  ;;  %v468_v18 = vmov 1966171168  }
  0x3e   :  { %v312_v25 = vpack.c.bf16 %v96_v24, %v94_v23  ;;  %v98_v29 = vld [vmem:[#allocation7 + $0x20] sm:$0xff]  ;;  %v75_v32 = vld [vmem:[#allocation5 + $0x70] sm:$0xff]  ;;  %v314_v33 = vpack.c.bf16 %v101_v28, %v99_v27  ;;  %v78_v35 = vld [vmem:[#allocation5 + $0x88] sm:$0xff]  ;;  %v274_v19 = vunpack.c.l.s4 %v468_v18 }
  0x3f   :  { %333 = vmatpush1.bf16.msra.mxu0 %v332_v14  ;;  %311 = vmatprep.subr.bf16.mxu1 %v310_v22  ;;  %v73_v31 = vld [vmem:[#allocation5 + $0x60] sm:$0xff]  ;;  %v100_v34 = vld [vmem:[#allocation7 + $0x30] sm:$0xff]  ;;  %v80_v36 = vld [vmem:[#allocation5 + $0x98] sm:$0xff]  ;;  %v259_v14 = vshrl.u32 %v258_v11, 7 }
  0x40   :  { %335 = vmatprep.subr.bf16.mxu0 %v334_v17  ;;  %313 = vmatpush1.bf16.msra.mxu1 %v312_v25  ;;  %v316_v37 = vpack.c.bf16 %v100_v34, %v98_v29  ;;  %v103_v38 = vld [vmem:[#allocation7 + $0x48] sm:$0xff]  ;;  %v105_v39 = vld [vmem:[#allocation7 + $0x58] sm:$0xff]  ;;  %v102_v40 = vld [vmem:[#allocation7 + $0x40] sm:$0xff]  ;;  %v340_v42 = vpack.c.bf16 %v75_v32, %v73_v31  ;;  %v342_v46 = vpack.c.bf16 %v80_v36, %v78_v35  ;;  %v275_v23 = vunpack.c.0.s8 %v274_v19 }
  0x41   :  { %315 = vmatprep.subr.bf16.mxu1 %v314_v33  ;;  %v104_v41 = vld [vmem:[#allocation7 + $0x50] sm:$0xff]  ;;  %v77_v43 = vld [vmem:[#allocation5 + $0x80] sm:$0xff]  ;;  %v318_v45 = vpack.c.bf16 %v105_v39, %v103_v38  ;;  %v82_v47 = vld [vmem:[#allocation5 + $0xa8] sm:$0xff]  ;;  %v260_v15 = vsub.s32 0, %v259_v14  ;;  %v264_v17 = vsub.s32 1, %v259_v14 }
  0x42   :  { %v79_v44 = vld [vmem:[#allocation5 + $0x90] sm:$0xff]  ;;  %v320_v48 = vpack.c.bf16 %v104_v41, %v102_v40  ;;  %v107_v49 = vld [vmem:[#allocation7 + $0x68] sm:$0xff]  ;;  %v109_v50 = vld [vmem:[#allocation7 + $0x78] sm:$0xff]  ;;  %v278_v29 = vsub.s32 %v275_v23, %v259_v14 }
  0x43   :  { %337 = vmatpush1.bf16.msra.mxu0 %v336_v26  ;;  %v84_v51 = vld [vmem:[#allocation5 + $0xb8] sm:$0xff]  ;;  %v322_v52 = vpack.c.bf16 %v109_v50, %v107_v49  ;;  %v106_v53 = vld [vmem:[#allocation7 + $0x60] sm:$0xff]  ;;  %v108_v54 = vld [vmem:[#allocation7 + $0x70] sm:$0xff]  ;;  %v344_v55 = vpack.c.bf16 %v79_v44, %v77_v43 }
  0x44   :  { %339 = vmatprep.subr.bf16.mxu0 %v338_v30  ;;  %317 = vmatpush1.bf16.msra.mxu1 %v316_v37  ;;  %v346_v56 = vpack.c.bf16 %v84_v51, %v82_v47  ;;  %v81_v57 = vld [vmem:[#allocation5 + $0xa0] sm:$0xff]  ;;  %v83_v58 = vld [vmem:[#allocation5 + $0xb0] sm:$0xff]  ;;  %v324_v59 = vpack.c.bf16 %v108_v54, %v106_v53  ;;  %v86_v60 = vld [vmem:[#allocation5 + $0xc8] sm:$0xff] }
  0x45   :  { %319 = vmatprep.subr.bf16.mxu1 %v318_v45  ;;  %v88_v61 = vld [vmem:[#allocation5 + $0xd8] sm:$0xff]  ;;  %v348_v62 = vpack.c.bf16 %v83_v58, %v81_v57  ;;  %v85_v0 = vld [vmem:[#allocation5 + $0xc0] sm:$0xff]  ;;  %v87_v1 = vld [vmem:[#allocation5 + $0xd0] sm:$0xff] }
  0x46   :  { %v350_v63 = vpack.c.bf16 %v88_v61, %v86_v60  ;;  %v93_v2 = vld [vmem:[%s561_s1] sm:$0x1]  ;;  %v90_v3 = vld [vmem:[#allocation5 + $0xe8] sm:$0xff]  ;;  %v92_v4 = vld [vmem:[#allocation5 + $0xf8] sm:$0xff]  ;;  %v352_v5 = vpack.c.bf16 %v87_v1, %v85_v0 }
  0x47   :  { %341 = vmatpush1.bf16.msra.mxu0 %v340_v42  ;;  %v354_v6 = vpack.c.bf16 %v92_v4, %v90_v3  ;;  %v89_v7 = vld [vmem:[#allocation5 + $0xe0] sm:$0xff]  ;;  %v91_v8 = vld [vmem:[#allocation5 + $0xf0] sm:$0xff]  ;;  %v60_v10 = vld [vmem:[#allocation2] sm:$0x1] }
  0x48   :  { %343 = vmatprep.subr.bf16.mxu0 %v342_v46  ;;  %321 = vmatpush1.bf16.msra.mxu1 %v320_v48  ;;  %v356_v9 = vpack.c.bf16 %v91_v8, %v89_v7  ;;  %v256_v16 = vld [vmem:[%s564_s4] sm:$0x3]  ;;  %s434_s4 = scalar_lea.vmem %s300_s8, 32 }
  0x49   :  { %323 = vmatprep.subr.bf16.mxu1 %v322_v52  ;;  %v261_v20 = vrot.slane %v256_v16, %v260_v15  ;;  %v265_v22 = vrot.slane %v256_v16, %v264_v17  ;;  %p435_p10 = scmp.ne.s32.totalorder %s300_s8, %s434_s4  ;;  %p440_p12 = scmp.lt.s32.totalorder %s434_s4, %s434_s4 }
  0x4b   :  { %345 = vmatpush1.bf16.msra.mxu0 %v344_v55  ;;  %p441_p13 = por %p440_p12, %p439_p11 }
  0x4c   :  { %347 = vmatprep.subr.bf16.mxu0 %v346_v56  ;;  %325 = vmatpush1.bf16.msra.mxu1 %v324_v59 }
  0x4d   :  { %p442_p0 = pnand %p441_p13, %p435_p10 }
  0x4f   :  { %349 = vmatpush1.bf16.msra.mxu0 %v348_v62  ;;  %309 = vmatmul.mubr.msk.f32.vlgmr.msra.gmra.mrb[0].mxu1 %vm110_vm0, %v93_v2 }
  0x50   :  { %351 = vmatprep.subr.bf16.mxu0 %v350_v63 }
  0x53   :  { %353 = vmatpush1.bf16.msra.mxu0 %v352_v5 }
  0x54   :  { %355 = vmatprep.subr.bf16.mxu0 %v354_v6 }
  0x57   :  { %357 = vmatpush1.bf16.msra.mxu0 %v356_v9 }
  0x5a   :  { %250 = vmatmul.mubr.f32.vlgmr.msra.gmra.mrb[0].mxu0 %v60_v10 }
 0x122   :  { %v180_v12 = vpop.f32.mrb[0].mxu1 }
 0x123   :  { %v182_v13 = vpop.f32.mrb[1].mxu1 }
 0x12d   :  { %v251_v21 = vpop.f32.mrb[0].mxu0 }
 0x12e   :  { %v252_v24 = vadd.f32 %v251_v21, %v180_v12  ;;  %v253_v25 = vpop.f32.mrb[1].mxu0 }
 0x12f   :  { %v254_v26 = vadd.f32 %v253_v25, %v182_v13 }
 0x130   :  { %v268_v27 = vadd.f32 %v261_v20, %v252_v24 }
 0x131   :  { %v269_v28 = vadd.f32 %v265_v22, %v254_v26 }
 0x133   :  { %v272_v30 = vcombine.low %v268_v27, %v269_v28 }
 0x135   :  { %v279_v31 = vrot.slane %v272_v30, %v278_v29 }
 0x137   :  { %v286_v32 = vrot.slane %v279_v31, %v278_v29 }
 0x139   :  { %292 = vst.msk [vmem:[#allocation8] sm:$0x3] %vm290_vm1, %v286_v32 }
 0x13a   :  { %445 = shalt.err (!%p442_p0)
}
 0x13b   :  { %s446_s11 = scalar_lea.hbm %s565_s5, 32 }
 0x13c   :  { %p447_p1 = scmp.ne.s32.totalorder %s565_s5, %s446_s11  ;;  %p450_p2 = scmp.lt.u32.totalorder %s446_s11, %s565_s5 }
 0x13e   :  { %p452_p3 = pnand %p450_p2, %p447_p1 }
 0x140   :  { %455 = shalt.err (!%p452_p3)
}
 0x141   :  { %302 = dma.vmem_to_hbm [thread:$0]  %s300_s8, 32, %s565_s5, [#allocation4]  }
 0x142   :  { %460 = dma.done.wait [#allocation4], 32  }
 0x143   :  { %461 = vsyncadd [#allocation4], 4294967264 }
 0x144   :  { %306 = vsyncpa [#allocation3], 1 }
 0x145   :  { %307 = vsyncpa [#allocation6], 1 }
 0x146   :  { %308 = vsyncpa [#allocation4], 1 }

</bundles_post_ra>
